<compile_context>
chip_gen: v5e
topology: v5e:2x2
jax: 0.10.0
libtpu: 0.0.40
codegen_flags: <defaults>
</compile_context>

<pallas_src>
import jax
import jax.numpy as jnp
from jax.experimental import pallas as pl
from jax.experimental.pallas import tpu as pltpu

LANE = 128
SUBLANE = 8


def _round_up(x, m):
    return ((x + m - 1) // m) * m


# ----------------------------------------------------------------------------
# Fused kernel: 3x3 conv (single deep-K matmul on im2col patches) + BN + ReLU
#               + per-sample global-avg-pool (MXU selection matmul) + final FC.
# ----------------------------------------------------------------------------
def fused_conv_pool_fc_kernel(p_ref, w_ref, b_ref, s_ref, wfc_ref, bfc_ref,
                              out_ref, pool_acc):
    # p_ref    : [TR, KCP]  bf16  im2col patches tile (batch folded into rows)
    # w_ref    : [KCP, CP]  bf16  folded conv weights (BN scale folded, lane-padded)
    # b_ref    : [1, CP]    f32   conv bias + BN bias (folded, lane-padded)
    # s_ref    : [NP, TR]   bf16  per-sample 0/1 selection matrix tile
    # wfc_ref  : [CP, NCP]  bf16  FC weight / (H*W), lane-padded
    # bfc_ref  : [1, NCP]   f32   FC bias, lane-padded
    # out_ref  : [NP, NCP]  f32   padded logits
    # pool_acc : [NP, CP]   f32   running per-sample pooled sums
    t = pl.program_id(0)

    @pl.when(t == 0)
    def _init():
        pool_acc[...] = jnp.zeros_like(pool_acc)

    # Whole 3x3 conv for TR output pixels: one K = 9*Cin MXU matmul (f32 acc).
    act = jnp.dot(p_ref[...], w_ref[...],
                  preferred_element_type=jnp.float32)            # [TR, CP]
    act = jnp.maximum(act + b_ref[...], 0.0)                     # folded BN bias + ReLU

    # Mask + per-sample pooling sum as one MXU op (rows of other samples /
    # padding have a 0 in S, so no separate mask multiply or XLU reduction).
    pool_acc[...] += jnp.dot(s_ref[...], act.astype(jnp.bfloat16),
                             preferred_element_type=jnp.float32)  # [NP, CP]

    @pl.when(t == pl.num_programs(0) - 1)
    def _finalize():
        out_ref[...] = jnp.dot(pool_acc[...].astype(jnp.bfloat16), wfc_ref[...],
                               preferred_element_type=jnp.float32) + bfc_ref[...]


# ----------------------------------------------------------------------------
# WrappedModel forward (wrapper simply runs the inner net)
# ----------------------------------------------------------------------------
def wrapped_model_forward(x_nchw, params, *, tile_rows=1024):
    N, Cin, H, W = x_nchw.shape
    Cout = params["w_conv"].shape[0]
    NC = params["w_fc"].shape[1]

    KCP = _round_up(9 * Cin, SUBLANE)     # deep-K contraction width (sublane-padded)
    CP = _round_up(Cout, LANE)            # lane-dense padded conv-channel width
    NCP = _round_up(NC, LANE)             # lane-dense padded class width
    NP = _round_up(N, SUBLANE)            # sublane-padded batch

    # ---- one-time constant folding on the (tiny) parameters ----
    eps = 1e-5
    inv_std = 1.0 / jnp.sqrt(params["bn_var"] + eps)
    scale = params["bn_gamma"] * inv_std                                     # [Cout]
    bias = params["bn_beta"] + (params["b_conv"] - params["bn_mean"]) * scale

    w = params["w_conv"] * scale[:, None, None, None]                        # fold BN scale
    w2 = jnp.transpose(w, (2, 3, 1, 0)).reshape(9 * Cin, Cout)               # [(kh,kw,c), Cout]
    w2 = jnp.pad(w2, ((0, KCP - 9 * Cin), (0, CP - Cout))).astype(jnp.bfloat16)
    bias_p = jnp.pad(bias, (0, CP - Cout)).reshape(1, CP).astype(jnp.float32)

    wfc_p = jnp.pad(params["w_fc"] / (H * W),                                # fold 1/(H*W)
                    ((0, CP - Cout), (0, NCP - NC))).astype(jnp.bfloat16)
    bfc_p = jnp.pad(params["b_fc"], (0, NCP - NC)).reshape(1, NCP).astype(jnp.float32)

    # ---- im2col patches: batch folded into the matmul M dimension ----
    # Only valid output positions are kept (no wrap rows), so the total row
    # count is N*H*W and the selection matrix does masking + pooling together.
    RT0 = N * H * W
    TR = min(_round_up(tile_rows, LANE), _round_up(RT0, LANE))   # multiple of 128
    RT = _round_up(RT0, TR)
    T = RT // TR

    xp = jnp.pad(jnp.transpose(x_nchw, (0, 2, 3, 1)),
                 ((0, 0), (1, 1), (1, 1), (0, 0)))               # [N, H+2, W+2, Cin]
    patches = jnp.concatenate(
        [xp[:, dh:dh + H, dw:dw + W, :] for dh in range(3) for dw in range(3)],
        axis=-1).reshape(RT0, 9 * Cin)                           # [N*H*W, 9*Cin]
    patches = jnp.pad(patches, ((0, RT - RT0), (0, KCP - 9 * Cin)))
    patches = patches.astype(jnp.bfloat16)                       # bf16 MXU LHS

    # Per-sample 0/1 selection matrix (1/(H*W) folded into wfc_p); exact in bf16.
    q = jnp.arange(RT)
    sel = ((q[None, :] // (H * W)) == jnp.arange(NP)[:, None]) & (q[None, :] < RT0)
    S = sel.astype(jnp.bfloat16)                                 # [NP, RT]

    out_p = pl.pallas_call(
        fused_conv_pool_fc_kernel,
        out_shape=jax.ShapeDtypeStruct((NP, NCP), jnp.float32),
        grid=(T,),
        in_specs=[
            pl.BlockSpec((TR, KCP), lambda t: (t, 0)),           # im2col patch tile
            pl.BlockSpec((KCP, CP), lambda t: (0, 0)),           # conv weights
            pl.BlockSpec((1, CP), lambda t: (0, 0)),             # folded bias
            pl.BlockSpec((NP, TR), lambda t: (0, t)),            # pooling/selection tile
            pl.BlockSpec((CP, NCP), lambda t: (0, 0)),           # FC weight
            pl.BlockSpec((1, NCP), lambda t: (0, 0)),            # FC bias
        ],
        out_specs=pl.BlockSpec((NP, NCP), lambda t: (0, 0)),
        scratch_shapes=[pltpu.VMEM((NP, CP), jnp.float32)],
        compiler_params=pltpu.CompilerParams(
            dimension_semantics=("arbitrary",)),
    )(patches, w2, bias_p, S, wfc_p, bfc_p)

    return out_p[:N, :NC]


# ----------------------------------------------------------------------------
# Pure-JAX f32 reference (for correctness check)
# ----------------------------------------------------------------------------
def reference_forward(x_nchw, params):
    eps = 1e-5
    y = jax.lax.conv_general_dilated(
        x_nchw, params["w_conv"], window_strides=(1, 1), padding="SAME",
        dimension_numbers=("NCHW", "OIHW", "NCHW"),
    ) + params["b_conv"][None, :, None, None]
    y = (y - params["bn_mean"][None, :, None, None]) / jnp.sqrt(
        params["bn_var"][None, :, None, None] + eps
    ) * params["bn_gamma"][None, :, None, None] + params["bn_beta"][None, :, None, None]
    y = jnp.maximum(y, 0.0)
    pooled = jnp.mean(y, axis=(2, 3))                                # [N, Cout]
    return pooled @ params["w_fc"] + params["b_fc"]


if __name__ == "__main__":
    N, Cin, H, W = 2, 4, 16, 16
    Cout, num_classes = 16, 8

    key = jax.random.PRNGKey(0)
    kx, kw, kb, kg, kbt, km, kv, kwf, kbf = jax.random.split(key, 9)

    x = jax.random.normal(kx, (N, Cin, H, W), dtype=jnp.float32)

    params = {
        "w_conv":   0.1 * jax.random.normal(kw, (Cout, Cin, 3, 3), dtype=jnp.float32),
        "b_conv":   0.1 * jax.random.normal(kb, (Cout,), dtype=jnp.float32),
        "bn_gamma": 1.0 + 0.1 * jax.random.normal(kg, (Cout,), dtype=jnp.float32),
        "bn_beta":  0.1 * jax.random.normal(kbt, (Cout,), dtype=jnp.float32),
        "bn_mean":  0.1 * jax.random.normal(km, (Cout,), dtype=jnp.float32),
        "bn_var":   jnp.abs(jax.random.normal(kv, (Cout,), dtype=jnp.float32)) + 0.5,
        "w_fc":     0.1 * jax.random.normal(kwf, (Cout, num_classes), dtype=jnp.float32),
        "b_fc":     0.1 * jax.random.normal(kbf, (num_classes,), dtype=jnp.float32),
    }

    out = jax.block_until_ready(wrapped_model_forward(x, params))
    ref = jax.block_until_ready(reference_forward(x, params))

    assert out.shape == (N, num_classes)
    # bf16 MXU operands with f32 accumulation -> loosened tolerance vs f32 reference.
    assert jnp.allclose(out, ref, atol=2e-2, rtol=2e-2), "mismatch vs reference"

    print("KERNEL_OK")
</pallas_src>

<mosaic_0001>
module attributes {stable_mosaic.version = 11 : i64} {
  func.func @fused_conv_pool_fc_kernel(%arg0: i32, %arg1: memref<512x40xbf16, #tpu.memory_space<vmem>>, %arg2: memref<40x128xbf16, #tpu.memory_space<vmem>>, %arg3: memref<1x128xf32, #tpu.memory_space<vmem>>, %arg4: memref<8x512xbf16, #tpu.memory_space<vmem>>, %arg5: memref<128x128xbf16, #tpu.memory_space<vmem>>, %arg6: memref<1x128xf32, #tpu.memory_space<vmem>>, %arg7: memref<8x128xf32, #tpu.memory_space<vmem>>, %arg8: memref<8x128xf32, #tpu.memory_space<vmem>>) attributes {dimension_semantics = [#tpu.dimension_semantics<arbitrary>], iteration_bounds = array<i64: 1>, scalar_prefetch = 0 : i64, scratch_operands = 1 : i64, tpu.core_type = #tpu.core_type<tc>, window_params = [{transform_indices = @transform_0, window_bounds = array<i64: 512, 40>}, {pipeline_mode = #tpu.pipeline_mode<synchronous>, transform_indices = @transform_1, window_bounds = array<i64: 40, 128>}, {pipeline_mode = #tpu.pipeline_mode<synchronous>, transform_indices = @transform_2, window_bounds = array<i64: 1, 128>}, {transform_indices = @transform_3, window_bounds = array<i64: 8, 512>}, {pipeline_mode = #tpu.pipeline_mode<synchronous>, transform_indices = @transform_4, window_bounds = array<i64: 128, 128>}, {pipeline_mode = #tpu.pipeline_mode<synchronous>, transform_indices = @transform_5, window_bounds = array<i64: 1, 128>}, {pipeline_mode = #tpu.pipeline_mode<synchronous>, transform_indices = @transform_6, window_bounds = array<i64: 8, 128>}]} {
    %c0_i32 = arith.constant 0 : i32
    %0 = arith.cmpi eq, %arg0, %c0_i32 : i32
    %1 = arith.extui %0 : i1 to i32
    %c0_i32_0 = arith.constant 0 : i32
    %2 = arith.cmpi ne, %1, %c0_i32_0 : i32
    scf.if %2 {
      %cst_16 = arith.constant 0.000000e+00 : f32
      %20 = vector.broadcast %cst_16 : f32 to vector<8x128xf32>
      %c0_17 = arith.constant 0 : index
      %c0_18 = arith.constant 0 : index
      %21 = vector.load %arg8[%c0_17, %c0_18] : memref<8x128xf32, #tpu.memory_space<vmem>>, vector<8x128xf32>
      tpu.vector_store %arg8[%c0_17, %c0_18], %20 {strides = array<i32>} : memref<8x128xf32, #tpu.memory_space<vmem>>, vector<8x128xf32>,
    } else {
    }
    %c0 = arith.constant 0 : index
    %c0_1 = arith.constant 0 : index
    %3 = vector.load %arg1[%c0, %c0_1] : memref<512x40xbf16, #tpu.memory_space<vmem>>, vector<512x40xbf16>
    %c0_2 = arith.constant 0 : index
    %c0_3 = arith.constant 0 : index
    %4 = vector.load %arg2[%c0_2, %c0_3] : memref<40x128xbf16, #tpu.memory_space<vmem>>, vector<40x128xbf16>
    %cst = arith.constant dense<0.000000e+00> : vector<512x128xf32>
    %5 = tpu.matmul %3, %4, %cst {dimension_numbers = #tpu.dot_dimension_numbers<[1], [0], [0], [1], [0, 0, 1, 1], [], []>} : vector<512x40xbf16>, vector<40x128xbf16>, vector<512x128xf32> -> vector<512x128xf32>
    %c0_4 = arith.constant 0 : index
    %c0_5 = arith.constant 0 : index
    %6 = vector.load %arg3[%c0_4, %c0_5] : memref<1x128xf32, #tpu.memory_space<vmem>>, vector<1x128xf32>
    %7 = vector.broadcast %6 : vector<1x128xf32> to vector<512x128xf32>
    %8 = arith.addf %5, %7 : vector<512x128xf32>
    %cst_6 = arith.constant 0.000000e+00 : f32
    %9 = vector.broadcast %cst_6 : f32 to vector<512x128xf32>
    %10 = arith.maximumf %8, %9 : vector<512x128xf32>
    %c0_7 = arith.constant 0 : index
    %c0_8 = arith.constant 0 : index
    %11 = vector.load %arg8[%c0_7, %c0_8] : memref<8x128xf32, #tpu.memory_space<vmem>>, vector<8x128xf32>
    %c0_9 = arith.constant 0 : index
    %c0_10 = arith.constant 0 : index
    %12 = vector.load %arg4[%c0_9, %c0_10] : memref<8x512xbf16, #tpu.memory_space<vmem>>, vector<8x512xbf16>
    %13 = arith.truncf %10 : vector<512x128xf32> to vector<512x128xbf16>
    %cst_11 = arith.constant dense<0.000000e+00> : vector<8x128xf32>
    %14 = tpu.matmul %12, %13, %cst_11 {dimension_numbers = #tpu.dot_dimension_numbers<[1], [0], [0], [1], [0, 0, 1, 1], [], []>} : vector<8x512xbf16>, vector<512x128xbf16>, vector<8x128xf32> -> vector<8x128xf32>
    %15 = arith.addf %11, %14 : vector<8x128xf32>
    %c0_12 = arith.constant 0 : index
    %c0_13 = arith.constant 0 : index
    %16 = vector.load %arg8[%c0_12, %c0_13] : memref<8x128xf32, #tpu.memory_space<vmem>>, vector<8x128xf32>
    tpu.vector_store %arg8[%c0_12, %c0_13], %15 {strides = array<i32>} : memref<8x128xf32, #tpu.memory_space<vmem>>, vector<8x128xf32>,
    %c0_i32_14 = arith.constant 0 : i32
    %17 = arith.cmpi eq, %arg0, %c0_i32_14 : i32
    %18 = arith.extui %17 : i1 to i32
    %c0_i32_15 = arith.constant 0 : i32
    %19 = arith.cmpi ne, %18, %c0_i32_15 : i32
    scf.if %19 {
      %c0_16 = arith.constant 0 : index
      %c0_17 = arith.constant 0 : index
      %20 = vector.load %arg8[%c0_16, %c0_17] : memref<8x128xf32, #tpu.memory_space<vmem>>, vector<8x128xf32>
      %21 = arith.truncf %20 : vector<8x128xf32> to vector<8x128xbf16>
      %c0_18 = arith.constant 0 : index
      %c0_19 = arith.constant 0 : index
      %22 = vector.load %arg5[%c0_18, %c0_19] : memref<128x128xbf16, #tpu.memory_space<vmem>>, vector<128x128xbf16>
      %cst_20 = arith.constant dense<0.000000e+00> : vector<8x128xf32>
      %23 = tpu.matmul %21, %22, %cst_20 {dimension_numbers = #tpu.dot_dimension_numbers<[1], [0], [0], [1], [0, 0, 1, 1], [], []>} : vector<8x128xbf16>, vector<128x128xbf16>, vector<8x128xf32> -> vector<8x128xf32>
      %c0_21 = arith.constant 0 : index
      %c0_22 = arith.constant 0 : index
      %24 = vector.load %arg6[%c0_21, %c0_22] : memref<1x128xf32, #tpu.memory_space<vmem>>, vector<1x128xf32>
      %25 = vector.broadcast %24 : vector<1x128xf32> to vector<8x128xf32>
      %26 = arith.addf %23, %25 : vector<8x128xf32>
      %c0_23 = arith.constant 0 : index
      %c0_24 = arith.constant 0 : index
      %27 = vector.load %arg7[%c0_23, %c0_24] : memref<8x128xf32, #tpu.memory_space<vmem>>, vector<8x128xf32>
      tpu.vector_store %arg7[%c0_23, %c0_24], %26 {strides = array<i32>} : memref<8x128xf32, #tpu.memory_space<vmem>>, vector<8x128xf32>,
    } else {
    }
    return
  }
  func.func @transform_0(%arg0: i32) -> (i32, i32) {
    %c0_i32 = arith.constant 0 : i32
    %c0_i32_0 = arith.constant 0 : i32
    return %arg0, %c0_i32 : i32, i32
  }
  func.func @transform_1(%arg0: i32) -> (i32, i32) {
    %c0_i32 = arith.constant 0 : i32
    %c0_i32_0 = arith.constant 0 : i32
    %c0_i32_1 = arith.constant 0 : i32
    return %c0_i32, %c0_i32_0 : i32, i32
  }
  func.func @transform_2(%arg0: i32) -> (i32, i32) {
    %c0_i32 = arith.constant 0 : i32
    %c0_i32_0 = arith.constant 0 : i32
    %c0_i32_1 = arith.constant 0 : i32
    return %c0_i32, %c0_i32_0 : i32, i32
  }
  func.func @transform_3(%arg0: i32) -> (i32, i32) {
    %c0_i32 = arith.constant 0 : i32
    %c0_i32_0 = arith.constant 0 : i32
    return %c0_i32, %arg0 : i32, i32
  }
  func.func @transform_4(%arg0: i32) -> (i32, i32) {
    %c0_i32 = arith.constant 0 : i32
    %c0_i32_0 = arith.constant 0 : i32
    %c0_i32_1 = arith.constant 0 : i32
    return %c0_i32, %c0_i32_0 : i32, i32
  }
  func.func @transform_5(%arg0: i32) -> (i32, i32) {
    %c0_i32 = arith.constant 0 : i32
    %c0_i32_0 = arith.constant 0 : i32
    %c0_i32_1 = arith.constant 0 : i32
    return %c0_i32, %c0_i32_0 : i32, i32
  }
  func.func @transform_6(%arg0: i32) -> (i32, i32) {
    %c0_i32 = arith.constant 0 : i32
    %c0_i32_0 = arith.constant 0 : i32
    %c0_i32_1 = arith.constant 0 : i32
    return %c0_i32, %c0_i32_0 : i32, i32
  }
}

</mosaic_0001>

<bundles_post_ra>
// kernel: tpu_custom_call.1
= control target key start
LH: loop header
LB: loop body
LE: loop exit
PB: predicated region body
PF: predicated region fallthrough
CT: control target
= control target key end

     0   :  { %vm375_vm0 = vcmask 1043456   ;;  %s1446_s0 = inlined_call_operand.vmem [shape: bf16[512,40], index: 0, kind: input, shape index: {}]   ;;  %s1447_s1 = inlined_call_operand.vmem [shape: bf16[40,128], index: 1, kind: input, shape index: {}]   ;;  %s1448_s2 = inlined_call_operand.vmem [shape: f32[1,128], index: 2, kind: input, shape index: {}]   ;;  %s1449_s3 = inlined_call_operand.vmem [shape: bf16[8,512], index: 3, kind: input, shape index: {}]   ;;  %s1450_s4 = inlined_call_operand.vmem [shape: bf16[128,128], index: 4, kind: input, shape index: {}]   ;;  %s1451_s5 = inlined_call_operand.vmem [shape: f32[1,128], index: 5, kind: input, shape index: {}]   ;;  %s1452_s6 = inlined_call_operand.hbm [shape: f32[8,128], index: 6, kind: output, shape index: {}]  }
   0x1   :  { %v98_v0 = vld [vmem:[%s1447_s1 + $0x10] sm:$0xf] }
   0x2   :  { %v272_v1 = vunpack.c.l.b16 %v98_v0 }
   0x4   :  { %v275_v2 = vpack.c.b16 %v272_v1, %v272_v1 }
   0x5   :  { %11 = vsyncpa [#allocation4], 0  ;;  %v1051_v4 = vld [vmem:[%s1447_s1 + $0x8] sm:$0xff]  ;;  %v1050_v5 = vld [vmem:[%s1447_s1] sm:$0xff]  ;;  %vm278_vm1 = vcmask 326656  }
   0x6   :  { %v377_v3 = vsel %vm375_vm0, %v275_v2, 0  ;;  %v1018_v6 = vld [vmem:[%s1446_s0] sm:$0xff]  ;;  %v1036_v7 = vld [vmem:[%s1446_s0 + $0x90] sm:$0xff]  ;;  %v1029_v9 = vld [vmem:[%s1446_s0 + $0x58] sm:$0xff] }
   0x7   :  { %384 = vmatpush.bf16.msra.mxu0 %v377_v3  ;;  %1061 = vmatpush.bf16.msra.mxu2 %v377_v3  ;;  %v1040_v8 = vld [vmem:[%s1446_s0 + $0xb0] sm:$0xff]  ;;  %v1019_v10 = vld [vmem:[%s1446_s0 + $0x8] sm:$0xff]  ;;  %v1037_v11 = vld [vmem:[%s1446_s0 + $0x98] sm:$0xff] }
   0x8   :  { %1062 = vmatpush.bf16.msra.mxu3 %v377_v3  ;;  %1060 = vmatpush.bf16.msra.mxu1 %v377_v3  ;;  %v1041_v12 = vld [vmem:[%s1446_s0 + $0xb8] sm:$0xff]  ;;  %v1030_v13 = vld [vmem:[%s1446_s0 + $0x60] sm:$0xff]  ;;  %v1020_v14 = vld [vmem:[%s1446_s0 + $0x10] sm:$0xff] }
   0x9   :  { %v1038_v15 = vld [vmem:[%s1446_s0 + $0xa0] sm:$0xff]  ;;  %v1031_v17 = vld [vmem:[%s1446_s0 + $0x68] sm:$0xff]  ;;  %v1021_v18 = vld [vmem:[%s1446_s0 + $0x18] sm:$0xff] }
   0xa   :  { %v1042_v16 = vld [vmem:[%s1446_s0 + $0xc0] sm:$0xff]  ;;  %v1039_v19 = vld [vmem:[%s1446_s0 + $0xa8] sm:$0xff]  ;;  %v1032_v21 = vld [vmem:[%s1446_s0 + $0x70] sm:$0xff] }
   0xb   :  { %385 = vmatpush.bf16.msra.mxu0 %v1051_v4  ;;  %1064 = vmatpush.bf16.msra.mxu2 %v1051_v4  ;;  %v1043_v20 = vld [vmem:[%s1446_s0 + $0xc8] sm:$0xff]  ;;  %v1022_v22 = vld [vmem:[%s1446_s0 + $0x20] sm:$0xff]  ;;  %v1044_v23 = vld [vmem:[%s1446_s0 + $0xd0] sm:$0xff] }
   0xc   :  { %1065 = vmatpush.bf16.msra.mxu3 %v1051_v4  ;;  %1063 = vmatpush.bf16.msra.mxu1 %v1051_v4  ;;  %v1033_v24 = vld [vmem:[%s1446_s0 + $0x78] sm:$0xff]  ;;  %v1023_v25 = vld [vmem:[%s1446_s0 + $0x28] sm:$0xff]  ;;  %v1034_v27 = vld [vmem:[%s1446_s0 + $0x80] sm:$0xff] }
   0xd   :  { %v1045_v26 = vld [vmem:[%s1446_s0 + $0xd8] sm:$0xff]  ;;  %v1024_v28 = vld [vmem:[%s1446_s0 + $0x30] sm:$0xff]  ;;  %v1046_v29 = vld [vmem:[%s1446_s0 + $0xe0] sm:$0xff] }
   0xe   :  { %v1035_v30 = vld [vmem:[%s1446_s0 + $0x88] sm:$0xff]  ;;  %v1025_v31 = vld [vmem:[%s1446_s0 + $0x38] sm:$0xff]  ;;  %v1026_v33 = vld [vmem:[%s1446_s0 + $0x40] sm:$0xff] }
   0xf   :  { %386 = vmatpush.bf16.msra.mxu0 %v1050_v5  ;;  %1067 = vmatpush.bf16.msra.mxu2 %v1050_v5  ;;  %v1047_v32 = vld [vmem:[%s1446_s0 + $0xe8] sm:$0xff]  ;;  %v1048_v35 = vld [vmem:[%s1446_s0 + $0xf0] sm:$0xff]  ;;  %v1260_v37 = vld [vmem:[%s1448_s2] ss:$0 sm:$0xff]  ;;  %s1098_s2 = smov [#allocation3]  }
  0x10   :  { %1068 = vmatpush.bf16.msra.mxu3 %v1050_v5  ;;  %1066 = vmatpush.bf16.msra.mxu1 %v1050_v5  ;;  %v1027_v49 = vld [vmem:[%s1446_s0 + $0x48] sm:$0xff]  ;;  %v1049_v51 = vld [vmem:[%s1446_s0 + $0xf8] sm:$0xff]  ;;  %v1028_v1 = vld [vmem:[%s1446_s0 + $0x50] sm:$0xff]  ;;  %s807_s12 = sshll.u32 %s1098_s2, 4  ;;  %s808_s12 = int_to_ptr.vmem [resolvable:$true] %s807_s12 }
  0x12   :  { %954 = vmatmul.msk.bf16.vlgmr.msra.gmra.mxu0 %vm278_vm1, %v1018_v6  ;;  %972 = vmatmul.msk.bf16.vlgmr.msra.gmra.mxu2 %vm278_vm1, %v1036_v7 }
  0x13   :  { %976 = vmatmul.msk.bf16.vlgmr.msra.gmra.mxu3 %vm278_vm1, %v1040_v8  ;;  %965 = vmatmul.msk.bf16.vlgmr.msra.gmra.mxu1 %vm278_vm1, %v1029_v9 }
  0x22   :  { %955 = vmatmul.msk.bf16.gmra.mxu0 %vm278_vm1, %v1019_v10  ;;  %973 = vmatmul.msk.bf16.gmra.mxu2 %vm278_vm1, %v1037_v11 }
  0x23   :  { %977 = vmatmul.msk.bf16.gmra.mxu3 %vm278_vm1, %v1041_v12  ;;  %966 = vmatmul.msk.bf16.gmra.mxu1 %vm278_vm1, %v1030_v13 }
  0x32   :  { %956 = vmatmul.msk.bf16.gmra.mxu0 %vm278_vm1, %v1020_v14  ;;  %974 = vmatmul.msk.bf16.gmra.mxu2 %vm278_vm1, %v1038_v15 }
  0x33   :  { %978 = vmatmul.msk.bf16.gmra.mxu3 %vm278_vm1, %v1042_v16  ;;  %967 = vmatmul.msk.bf16.gmra.mxu1 %vm278_vm1, %v1031_v17 }
  0x42   :  { %957 = vmatmul.msk.bf16.gmra.mxu0 %vm278_vm1, %v1021_v18  ;;  %975 = vmatmul.msk.bf16.gmra.mxu2 %vm278_vm1, %v1039_v19 }
  0x43   :  { %979 = vmatmul.msk.bf16.gmra.mxu3 %vm278_vm1, %v1043_v20  ;;  %968 = vmatmul.msk.bf16.gmra.mxu1 %vm278_vm1, %v1032_v21 }
  0x52   :  { %958 = vmatmul.msk.bf16.gmra.mxu0 %vm278_vm1, %v1022_v22 }
  0x53   :  { %980 = vmatmul.msk.bf16.gmra.mxu3 %vm278_vm1, %v1044_v23  ;;  %969 = vmatmul.msk.bf16.gmra.mxu1 %vm278_vm1, %v1033_v24 }
  0x62   :  { %959 = vmatmul.msk.bf16.gmra.mxu0 %vm278_vm1, %v1023_v25 }
  0x63   :  { %981 = vmatmul.msk.bf16.gmra.mxu3 %vm278_vm1, %v1045_v26  ;;  %970 = vmatmul.msk.bf16.gmra.mxu1 %vm278_vm1, %v1034_v27 }
  0x72   :  { %960 = vmatmul.msk.bf16.gmra.mxu0 %vm278_vm1, %v1024_v28 }
  0x73   :  { %982 = vmatmul.msk.bf16.gmra.mxu3 %vm278_vm1, %v1046_v29  ;;  %971 = vmatmul.msk.bf16.gmra.mxu1 %vm278_vm1, %v1035_v30 }
  0x82   :  { %961 = vmatmul.msk.bf16.gmra.mxu0 %vm278_vm1, %v1025_v31 }
  0x83   :  { %983 = vmatmul.msk.bf16.gmra.mxu3 %vm278_vm1, %v1047_v32 }
  0x8f   :  { %v388_v34 = vpop.f32.mrf.mxu0 }
  0x90   :  { %v443_v36 = vpop.f32.mrf.mxu1  ;;  %v389_v39 = vadd.f32 %v1260_v37, %v388_v34 }
  0x91   :  { %v444_v9 = vadd.f32 %v1260_v37, %v443_v36 }
  0x92   :  { %962 = vmatmul.msk.bf16.gmra.mxu0 %vm278_vm1, %v1026_v33  ;;  %v548_v44 = vmax.f32 %v389_v39, 0.0 }
  0x93   :  { %984 = vmatmul.msk.bf16.gmra.mxu3 %vm278_vm1, %v1048_v35  ;;  %v570_v17 = vmax.f32 %v444_v9, 0.0 }
  0x95   :  { %v1264_v38 = vpop.f32.mrf.mxu2 }
  0x96   :  { %v498_v40 = vpop.f32.mrf.mxu3 }
  0x97   :  { %v390_v41 = vpop.f32.mrf.mxu0  ;;  %v499_v6 = vadd.f32 %v1260_v37, %v498_v40 }
  0x98   :  { %v391_v42 = vadd.f32 %v1260_v37, %v390_v41  ;;  %v445_v43 = vpop.f32.mrf.mxu1 }
  0x99   :  { %v446_v11 = vadd.f32 %v1260_v37, %v445_v43  ;;  %v592_v13 = vmax.f32 %v499_v6, 0.0 }
  0x9a   :  { %v549_v45 = vmax.f32 %v391_v42, 0.0 }
  0x9b   :  { %v571_v18 = vmax.f32 %v446_v11, 0.0 }
  0x9c   :  { %v1268_v46 = vpack.c.bf16 %v549_v45, %v548_v44 }
  0x9d   :  { %v1270_v47 = vpop.f32.mrf.mxu2  ;;  %v1306_v25 = vpack.c.bf16 %v571_v18, %v570_v17 }
  0x9e   :  { %v500_v48 = vpop.f32.mrf.mxu3 }
  0x9f   :  { %v393_v50 = vpop.f32.mrf.mxu0  ;;  %v501_v2 = vadd.f32 %v1260_v37, %v500_v48 }
  0xa0   :  { %v1278_v52 = vpop.f32.mrf.mxu1  ;;  %v394_v54 = vadd.f32 %v1260_v37, %v393_v50 }
  0xa1   :  { %v593_v10 = vmax.f32 %v501_v2, 0.0 }
  0xa2   :  { %963 = vmatmul.msk.bf16.gmra.mxu0 %vm278_vm1, %v1027_v49  ;;  %v550_v59 = vmax.f32 %v394_v54, 0.0 }
  0xa3   :  { %985 = vmatmul.msk.bf16.gmra.mxu3 %vm278_vm1, %v1049_v51  ;;  %v637_v20 = vpack.c.bf16 %v593_v10, %v592_v13  ;;  %v479_v10 = vadd.f32 %v1260_v37, %v1264_v38 }
  0xa5   :  { %v1282_v53 = vpop.f32.mrf.mxu2 }
  0xa6   :  { %v503_v55 = vpop.f32.mrf.mxu3 }
  0xa7   :  { %v395_v56 = vpop.f32.mrf.mxu0  ;;  %v504_v62 = vadd.f32 %v1260_v37, %v503_v55 }
  0xa8   :  { %v396_v57 = vadd.f32 %v1260_v37, %v395_v56  ;;  %v1286_v58 = vpop.f32.mrf.mxu1 }
  0xa9   :  { %v594_v7 = vmax.f32 %v504_v62, 0.0 }
  0xaa   :  { %v551_v60 = vmax.f32 %v396_v57, 0.0 }
  0xac   :  { %v1288_v61 = vpack.c.bf16 %v551_v60, %v550_v59  ;;  %v484_v60 = vadd.f32 %v1260_v37, %v1282_v53  ;;  %v481_v53 = vadd.f32 %v1260_v37, %v1270_v47 }
  0xad   :  { %v485_v63 = vpop.f32.mrf.mxu2 }
  0xae   :  { %v505_v0 = vpop.f32.mrf.mxu3  ;;  %v585_v38 = vmax.f32 %v481_v53, 0.0 }
  0xaf   :  { %v506_v3 = vadd.f32 %v1260_v37, %v505_v0  ;;  %v398_v4 = vpop.f32.mrf.mxu0 }
  0xb0   :  { %v1296_v5 = vpop.f32.mrf.mxu1  ;;  %v399_v15 = vadd.f32 %v1260_v37, %v398_v4 }
  0xb1   :  { %v595_v8 = vmax.f32 %v506_v3, 0.0 }
  0xb2   :  { %964 = vmatmul.msk.bf16.gmra.mxu0 %vm278_vm1, %v1028_v1  ;;  %v552_v23 = vmax.f32 %v399_v15, 0.0  ;;  %v486_v1 = vadd.f32 %v1260_v37, %v485_v63 }
  0xb3   :  { %v638_v12 = vpack.c.bf16 %v595_v8, %v594_v7 }
  0xb4   :  { %v587_v13 = vmax.f32 %v486_v1, 0.0 }
  0xb5   :  { %v488_v14 = vpop.f32.mrf.mxu2  ;;  %687 = vmatpush.bf16.msrb.mxu3 %v638_v12  ;;  %v586_v12 = vmax.f32 %v484_v60, 0.0 }
  0xb6   :  { %v508_v16 = vpop.f32.mrf.mxu3  ;;  %v489_v49 = vadd.f32 %v1260_v37, %v488_v14 }
  0xb7   :  { %v400_v19 = vpop.f32.mrf.mxu0  ;;  %v509_v27 = vadd.f32 %v1260_v37, %v508_v16 }
  0xb8   :  { %v401_v21 = vadd.f32 %v1260_v37, %v400_v19  ;;  %v1304_v22 = vpop.f32.mrf.mxu1  ;;  %v588_v2 = vmax.f32 %v489_v49, 0.0  ;;  %v584_v19 = vmax.f32 %v479_v10, 0.0 }
  0xb9   :  { %688 = vmatpush.bf16.msrb.mxu3 %v637_v20  ;;  %v596_v33 = vmax.f32 %v509_v27, 0.0  ;;  %v634_v20 = vpack.c.bf16 %v587_v13, %v586_v12  ;;  %v456_v27 = vadd.f32 %v1260_v37, %v1304_v22 }
  0xba   :  { %v553_v24 = vmax.f32 %v401_v21, 0.0 }
  0xbc   :  { %v1308_v26 = vpack.c.bf16 %v553_v24, %v552_v23  ;;  %v454_v24 = vadd.f32 %v1260_v37, %v1296_v5  ;;  %v575_v5 = vmax.f32 %v456_v27, 0.0 }
  0xbd   :  { %v490_v28 = vpop.f32.mrf.mxu2 }
  0xbe   :  { %v510_v29 = vpop.f32.mrf.mxu3  ;;  %v491_v50 = vadd.f32 %v1260_v37, %v490_v28 }
  0xbf   :  { %v511_v30 = vadd.f32 %v1260_v37, %v510_v29  ;;  %v403_v31 = vpop.f32.mrf.mxu0 }
  0xc0   :  { %v458_v32 = vpop.f32.mrf.mxu1  ;;  %v404_v39 = vadd.f32 %v1260_v37, %v403_v31  ;;  %v589_v3 = vmax.f32 %v491_v50, 0.0  ;;  %v633_v31 = vpack.c.bf16 %v585_v38, %v584_v19 }
  0xc1   :  { %v597_v34 = vmax.f32 %v511_v30, 0.0  ;;  %v459_v16 = vadd.f32 %v1260_v37, %v458_v32 }
  0xc2   :  { %v554_v44 = vmax.f32 %v404_v39, 0.0  ;;  %v635_v14 = vpack.c.bf16 %v589_v3, %v588_v2 }
  0xc3   :  { %v1312_v35 = vpack.c.bf16 %v597_v34, %v596_v33  ;;  %v576_v28 = vmax.f32 %v459_v16, 0.0  ;;  %v449_v34 = vadd.f32 %v1260_v37, %v1278_v52 }
  0xc5   :  { %v493_v36 = vpop.f32.mrf.mxu2 }
  0xc6   :  { %v513_v40 = vpop.f32.mrf.mxu3  ;;  %v494_v45 = vadd.f32 %v1260_v37, %v493_v36  ;;  %v451_v36 = vadd.f32 %v1260_v37, %v1286_v58 }
  0xc7   :  { %v405_v41 = vpop.f32.mrf.mxu0  ;;  %v514_v54 = vadd.f32 %v1260_v37, %v513_v40  ;;  %v574_v40 = vmax.f32 %v454_v24, 0.0 }
  0xc8   :  { %v406_v42 = vadd.f32 %v1260_v37, %v405_v41  ;;  %v460_v43 = vpop.f32.mrf.mxu1  ;;  %v590_v56 = vmax.f32 %v494_v45, 0.0  ;;  %v572_v45 = vmax.f32 %v449_v34, 0.0 }
  0xc9   :  { %v598_v7 = vmax.f32 %v514_v54, 0.0  ;;  %v461_v17 = vadd.f32 %v1260_v37, %v460_v43  ;;  %v628_v52 = vpack.c.bf16 %v575_v5, %v574_v40 }
  0xca   :  { %v555_v48 = vmax.f32 %v406_v42, 0.0 }
  0xcb   :  { %v577_v29 = vmax.f32 %v461_v17, 0.0 }
  0xcc   :  { %v1319_v51 = vpack.c.bf16 %v555_v48, %v554_v44  ;;  %v573_v48 = vmax.f32 %v451_v36, 0.0 }
  0xcd   :  { %v495_v55 = vpop.f32.mrf.mxu2  ;;  %v629_v42 = vpack.c.bf16 %v577_v29, %v576_v28 }
  0xce   :  { %v496_v57 = vadd.f32 %v1260_v37, %v495_v55  ;;  %v515_v59 = vpop.f32.mrf.mxu3  ;;  %v627_v58 = vpack.c.bf16 %v573_v48, %v572_v45 }
  0xcf   :  { %v516_v62 = vadd.f32 %v1260_v37, %v515_v59  ;;  %v1326_v0 = vpop.f32.mrf.mxu0 }
  0xd0   :  { %v591_v4 = vmax.f32 %v496_v57, 0.0  ;;  %v463_v6 = vpop.f32.mrf.mxu1 }
  0xd1   :  { %v599_v8 = vmax.f32 %v516_v62, 0.0  ;;  %v464_v63 = vadd.f32 %v1260_v37, %v463_v6 }
  0xd2   :  { %v636_v9 = vpack.c.bf16 %v591_v4, %v590_v56 }
  0xd3   :  { %v1331_v11 = vpack.c.bf16 %v599_v8, %v598_v7  ;;  %v578_v23 = vmax.f32 %v464_v63, 0.0 }
  0xd4   :  { %689 = vmatpush.bf16.msrb.mxu3 %v636_v9 }
  0xd6   :  { %v518_v15 = vpop.f32.mrf.mxu3 }
  0xd7   :  { %v1338_v18 = vpop.f32.mrf.mxu0  ;;  %v519_v32 = vadd.f32 %v1260_v37, %v518_v15 }
  0xd8   :  { %690 = vmatpush.bf16.msrb.mxu3 %v635_v14  ;;  %v465_v21 = vpop.f32.mrf.mxu1 }
  0xd9   :  { %v466_v47 = vadd.f32 %v1260_v37, %v465_v21  ;;  %v600_v43 = vmax.f32 %v519_v32, 0.0 }
  0xdb   :  { %v579_v30 = vmax.f32 %v466_v47, 0.0 }
  0xdc   :  { %691 = vmatpush.bf16.msrb.mxu3 %v634_v20 }
  0xdd   :  { %v630_v33 = vpack.c.bf16 %v579_v30, %v578_v23 }
  0xde   :  { %v520_v39 = vpop.f32.mrf.mxu3 }
  0xdf   :  { %v521_v41 = vadd.f32 %v1260_v37, %v520_v39  ;;  %v413_v22 = vpop.f32.mrf.mxu0  ;;  %674 = vmatpush.bf16.msrb.mxu2 %v630_v33  ;;  %v411_v39 = vadd.f32 %v1260_v37, %v1338_v18  ;;  %v1384_v18 = vld [vmem:[%s1449_s3 + $0x8] sm:$0xff] }
  0xe0   :  { %692 = vmatpush.bf16.msrb.mxu3 %v633_v31  ;;  %v468_v55 = vpop.f32.mrf.mxu1  ;;  %v414_v32 = vadd.f32 %v1260_v37, %v413_v22 }
  0xe1   :  { %v601_v44 = vmax.f32 %v521_v41, 0.0  ;;  %v469_v53 = vadd.f32 %v1260_v37, %v468_v55  ;;  %v409_v41 = vadd.f32 %v1260_v37, %v1326_v0  ;;  %v651_v0 = vunpack.c.l.b16 %v1384_v18 }
  0xe3   :  { %v1351_v49 = vpack.c.bf16 %v601_v44, %v600_v43  ;;  %675 = vmatpush.bf16.msrb.mxu2 %v629_v42  ;;  %v580_v17 = vmax.f32 %v469_v53, 0.0  ;;  %v558_v42 = vmax.f32 %v414_v32, 0.0  ;;  %v557_v43 = vmax.f32 %v411_v39, 0.0 }
  0xe4   :  { %v556_v45 = vmax.f32 %v409_v41, 0.0  ;;  %v655_v55 = vpack.c.b16 %v651_v0, %v651_v0 }
  0xe6   :  { %v523_v50 = vpop.f32.mrf.mxu3 }
  0xe7   :  { %v415_v54 = vpop.f32.mrf.mxu0  ;;  %676 = vmatpush.bf16.msrb.mxu2 %v628_v52  ;;  %v524_v56 = vadd.f32 %v1260_v37, %v523_v50  ;;  %v619_v52 = vpack.c.bf16 %v557_v43, %v556_v45  ;;  %v1056_v43 = vld [vmem:[%s1450_s4 + $0x20] sm:$0xff] }
  0xe8   :  { %v470_v2 = vpop.f32.mrf.mxu1  ;;  %v416_v29 = vadd.f32 %v1260_v37, %v415_v54 }
  0xe9   :  { %v602_v62 = vmax.f32 %v524_v56, 0.0  ;;  %v471_v19 = vadd.f32 %v1260_v37, %v470_v2 }
  0xea   :  { %v559_v40 = vmax.f32 %v416_v29, 0.0 }
  0xeb   :  { %677 = vmatpush.bf16.msrb.mxu2 %v627_v58  ;;  %v581_v23 = vmax.f32 %v471_v19, 0.0  ;;  %v613_v58 = vld [vmem:[%s1449_s3] sm:$0xff] }
  0xec   :  { %v620_v44 = vpack.c.bf16 %v559_v40, %v558_v42  ;;  %v649_v56 = vunpack.c.l.b16 %v613_v58  ;;  %v1059_v40 = vld [vmem:[%s1450_s4 + $0x38] sm:$0xff]  ;;  %v652_v42 = vunpack.c.h.b16 %v1384_v18 }
  0xed   :  { %v631_v28 = vpack.c.bf16 %v581_v23, %v580_v17 }
  0xee   :  { %v525_v57 = vpop.f32.mrf.mxu3 }
  0xef   :  { %v526_v59 = vadd.f32 %v1260_v37, %v525_v57  ;;  %v418_v60 = vpop.f32.mrf.mxu0  ;;  %678 = vmatpush.bf16.msrb.mxu2 %v1306_v25 }
  0xf0   :  { %v473_v7 = vpop.f32.mrf.mxu1  ;;  %v419_v47 = vadd.f32 %v1260_v37, %v418_v60 }
  0xf1   :  { %v603_v1 = vmax.f32 %v526_v59, 0.0  ;;  %v474_v12 = vadd.f32 %v1260_v37, %v473_v7  ;;  %v653_v59 = vpack.c.b16 %v649_v56, %v649_v56 }
  0xf2   :  { %v560_v33 = vmax.f32 %v419_v47, 0.0 }
  0xf3   :  { %v1356_v3 = vpack.c.bf16 %v603_v1, %v602_v62  ;;  %v582_v25 = vmax.f32 %v474_v12, 0.0 }
  0xf6   :  { %v1358_v4 = vpop.f32.mrf.mxu3 }
  0xf7   :  { %v420_v6 = vpop.f32.mrf.mxu0 }
  0xf8   :  { %v475_v10 = vpop.f32.mrf.mxu1  ;;  %v421_v20 = vadd.f32 %v1260_v37, %v420_v6 }
  0xf9   :  { %v476_v13 = vadd.f32 %v1260_v37, %v475_v10 }
  0xfa   :  { %v561_v30 = vmax.f32 %v421_v20, 0.0 }
  0xfb   :  { %v583_v14 = vmax.f32 %v476_v13, 0.0 }
  0xfc   :  { %v621_v5 = vpack.c.bf16 %v561_v30, %v560_v33 }
  0xfd   :  { %v632_v38 = vpack.c.bf16 %v583_v14, %v582_v25 }
  0xfe   :  { %v1360_v8 = vpop.f32.mrf.mxu3 }
  0xff   :  { %v423_v9 = vpop.f32.mrf.mxu0  ;;  %693 = vmatpush.bf16.msrb.mxu3 %v632_v38  ;;  %v531_v25 = vadd.f32 %v1260_v37, %v1360_v8  ;;  %v529_v38 = vadd.f32 %v1260_v37, %v1358_v4 }
 0x100   :  { %v424_v63 = vadd.f32 %v1260_v37, %v423_v9 }
 0x101   :  { %v605_v47 = vmax.f32 %v531_v25, 0.0  ;;  %v604_v29 = vmax.f32 %v529_v38, 0.0 }
 0x102   :  { %v562_v24 = vmax.f32 %v424_v63, 0.0 }
 0x103   :  { %694 = vmatpush.bf16.msrb.mxu3 %v631_v28  ;;  %v643_v4 = vpack.c.bf16 %v605_v47, %v604_v29 }
 0x106   :  { %v1366_v15 = vpop.f32.mrf.mxu3  ;;  %695 = vmatmul.bf16.vlgmr.msrb.gmra.mxu3 %v655_v55 }
 0x107   :  { %v425_v16 = vpop.f32.mrf.mxu0 }
 0x108   :  { %v426_v21 = vadd.f32 %v1260_v37, %v425_v16 }
 0x10a   :  { %v563_v27 = vmax.f32 %v426_v21, 0.0 }
 0x10c   :  { %v622_v31 = vpack.c.bf16 %v563_v27, %v562_v24 }
 0x10e   :  { %v535_v34 = vpop.f32.mrf.mxu3  ;;  %661 = vmatpush.bf16.msrb.mxu1 %v622_v31 }
 0x10f   :  { %v1374_v36 = vpop.f32.mrf.mxu0  ;;  %v536_v10 = vadd.f32 %v1260_v37, %v535_v34  ;;  %v650_v34 = vunpack.c.h.b16 %v613_v58 }
 0x110   :  { %v429_v30 = vadd.f32 %v1260_v37, %v1374_v36  ;;  %v1057_v36 = vld [vmem:[%s1450_s4 + $0x28] sm:$0xff] }
 0x111   :  { %v607_v14 = vmax.f32 %v536_v10, 0.0  ;;  %v654_v41 = vpack.c.b16 %v650_v34, %v650_v34 }
 0x112   :  { %662 = vmatpush.bf16.msrb.mxu1 %v621_v5  ;;  %v564_v39 = vmax.f32 %v429_v30, 0.0 }
 0x116   :  { %v538_v48 = vpop.f32.mrf.mxu3  ;;  %663 = vmatpush.bf16.msrb.mxu1 %v620_v44  ;;  %v1054_v44 = vld [vmem:[%s1450_s4 + $0x10] sm:$0xff] }
 0x117   :  { %v430_v22 = vpop.f32.mrf.mxu0  ;;  %v539_v6 = vadd.f32 %v1260_v37, %v538_v48 }
 0x118   :  { %v431_v8 = vadd.f32 %v1260_v37, %v430_v22  ;;  %v1052_v22 = vld [vmem:[%s1450_s4] sm:$0xff] }
 0x119   :  { %v608_v12 = vmax.f32 %v539_v6, 0.0 }
 0x11a   :  { %664 = vmatpush.bf16.msrb.mxu1 %v619_v52  ;;  %v565_v32 = vmax.f32 %v431_v8, 0.0 }
 0x11c   :  { %v623_v5 = vpack.c.bf16 %v565_v32, %v564_v39 }
 0x11e   :  { %v540_v50 = vpop.f32.mrf.mxu3  ;;  %665 = vmatpush.bf16.msrb.mxu1 %v1319_v51 }
 0x11f   :  { %v433_v54 = vpop.f32.mrf.mxu0 }
 0x122   :  { %666 = vmatpush.bf16.msrb.mxu1 %v1308_v26  ;;  %v541_v26 = vadd.f32 %v1260_v37, %v540_v50 }
 0x126   :  { %v543_v57 = vpop.f32.mrf.mxu3  ;;  %667 = vmatpush.bf16.msrb.mxu1 %v1288_v61  ;;  %v609_v61 = vmax.f32 %v541_v26, 0.0 }
 0x127   :  { %v435_v51 = vpop.f32.mrf.mxu0  ;;  %v544_v60 = vadd.f32 %v1260_v37, %v543_v57 }
 0x128   :  { %v645_v63 = vpack.c.bf16 %v609_v61, %v608_v12  ;;  %v436_v17 = vadd.f32 %v1260_v37, %v435_v51  ;;  %v1071_v51 = vld [vmem:[%s1451_s5] ss:$0 sm:$0xff] }
 0x129   :  { %v610_v7 = vmax.f32 %v544_v60, 0.0 }
 0x12a   :  { %668 = vmatpush.bf16.msrb.mxu1 %v1268_v46  ;;  %v534_v46 = vadd.f32 %v1260_v37, %v1366_v15  ;;  %v434_v15 = vadd.f32 %v1260_v37, %v433_v54  ;;  %v567_v27 = vmax.f32 %v436_v17, 0.0 }
 0x12c   :  { %v606_v20 = vmax.f32 %v534_v46, 0.0  ;;  %v566_v31 = vmax.f32 %v434_v15, 0.0 }
 0x12d   :  { %669 = vmatmul.bf16.vlgmr.msrb.gmra.mxu1 %v653_v59 }
 0x12e   :  { %v545_v62 = vpop.f32.mrf.mxu3  ;;  %v644_v24 = vpack.c.bf16 %v607_v14, %v606_v20  ;;  %v624_v33 = vpack.c.bf16 %v567_v27, %v566_v31 }
 0x12f   :  { %v546_v1 = vadd.f32 %v1260_v37, %v545_v62  ;;  %v438_v2 = vpop.f32.mrf.mxu0 }
 0x130   :  { %v439_v13 = vadd.f32 %v1260_v37, %v438_v2 }
 0x131   :  { %v611_v9 = vmax.f32 %v546_v1, 0.0 }
 0x132   :  { %v568_v21 = vmax.f32 %v439_v13, 0.0 }
 0x133   :  { %v646_v53 = vpack.c.bf16 %v611_v9, %v610_v7 }
 0x135   :  { %700 = vmatpush.bf16.msra.mxu1 %v646_v53 }
 0x137   :  { %v440_v16 = vpop.f32.mrf.mxu0 }
 0x138   :  { %v441_v19 = vadd.f32 %v1260_v37, %v440_v16  ;;  %v1058_v37 = vld [vmem:[%s1450_s4 + $0x30] sm:$0xff] }
 0x139   :  { %701 = vmatpush.bf16.msra.mxu1 %v645_v63 }
 0x13a   :  { %v569_v23 = vmax.f32 %v441_v19, 0.0 }
 0x13c   :  { %v625_v28 = vpack.c.bf16 %v569_v23, %v568_v21 }
 0x13d   :  { %702 = vmatpush.bf16.msra.mxu1 %v644_v24 }
 0x13e   :  { %679 = vmatpush.bf16.msrb.mxu2 %v625_v28 }
 0x141   :  { %703 = vmatpush.bf16.msra.mxu1 %v643_v4 }
 0x142   :  { %680 = vmatpush.bf16.msrb.mxu2 %v624_v33 }
 0x145   :  { %704 = vmatpush.bf16.msra.mxu1 %v1356_v3  ;;  %v656_v3 = vpack.c.b16 %v652_v42, %v652_v42 }
 0x146   :  { %681 = vmatpush.bf16.msrb.mxu2 %v623_v5 }
 0x149   :  { %705 = vmatpush.bf16.msra.mxu1 %v1351_v49  ;;  %682 = vmatmul.bf16.vlgmr.msrb.gmra.mxu2 %v654_v41  ;;  %v1055_v49 = vld [vmem:[%s1450_s4 + $0x18] sm:$0xff] }
 0x14a   :  { %788 = vmatpush.bf16.msra.mxu2 %v1059_v40 }
 0x14d   :  { %706 = vmatpush.bf16.msra.mxu1 %v1331_v11 }
 0x14e   :  { %789 = vmatpush.bf16.msra.mxu2 %v1058_v37 }
 0x151   :  { %707 = vmatpush.bf16.msra.mxu1 %v1312_v35  ;;  %v1053_v35 = vld [vmem:[%s1450_s4 + $0x8] sm:$0xff]  ;;  %s809_s4 = sshll.u32 %s1452_s6, 4  ;;  %s810_s4 = int_to_ptr.hbm [resolvable:$true] %s809_s4 }
 0x152   :  { %790 = vmatpush.bf16.msra.mxu2 %v1057_v36 }
 0x154   :  { %708 = vmatmul.bf16.vlgmr.msra.gmra.mxu1 %v656_v3 }
 0x156   :  { %791 = vmatpush.bf16.msra.mxu2 %v1056_v43 }
 0x15a   :  { %792 = vmatpush.bf16.msra.mxu2 %v1055_v49 }
 0x15e   :  { %793 = vmatpush.bf16.msra.mxu2 %v1054_v44 }
 0x162   :  { %794 = vmatpush.bf16.msra.mxu2 %v1053_v35 }
 0x166   :  { %795 = vmatpush.bf16.msra.mxu2 %v1052_v22 }
 0x189   :  { %v696_v11 = vpop.f32.mrf.mxu3 }
 0x191   :  { %v698_v48 = vpop.f32.mrf.mxu3 }
 0x1aa   :  { %v670_v45 = vpop.f32.mrf.mxu1 }
 0x1b2   :  { %v672_v52 = vpop.f32.mrf.mxu1 }
 0x1cc   :  { %v683_v50 = vpop.f32.mrf.mxu2 }
 0x1cd   :  { %v684_v54 = vadd.f32 %v683_v50, %v670_v45 }
 0x1cf   :  { %v697_v18 = vadd.f32 %v696_v11, %v684_v54 }
 0x1d1   :  { %v709_v0 = vpop.f32.mrf.mxu1 }
 0x1d2   :  { %v710_v58 = vadd.f32 %v709_v0, %v697_v18 }
 0x1d4   :  { %v719_v55 = vpack.c.bf16 %v710_v58, %v710_v58  ;;  %v685_v56 = vpop.f32.mrf.mxu2 }
 0x1d6   :  { %796 = vmatmul.bf16.vlgmr.msra.gmra.mxu2 %v719_v55 }
 0x1d9   :  { %v711_v57 = vpop.f32.mrf.mxu1 }
 0x259   :  { %v797_v59 = vpop.f32.mrf.mxu2 }
 0x25a   :  { %v798_v60 = vadd.f32 %v1071_v51, %v797_v59 }
 0x25c   :  { %801 = vst [vmem:[#allocation3] sm:$0xff] %v798_v60 }
 0x25d   :  { %812 = dma.vmem_to_hbm [thread:$0]  %s808_s12, 128, %s810_s4, [#allocation4]  }
 0x261   :  { %v799_v62 = vpop.f32.mrf.mxu2 }
 0x262   :  { %1096 = dma.done.wait [#allocation4], 128  }
 0x263   :  { %1097 = vsyncadd [#allocation4], 4294967168 }
 0x264   :  { %817 = vsyncpa [#allocation4], 1 }

</bundles_post_ra>
